<compile_context>
chip_gen: v7x
topology: tpu7x:2x2x1
jax: 0.10.0
libtpu: 0.0.40
codegen_flags: <defaults>
</compile_context>

<pallas_src>
import functools

import jax
import jax.numpy as jnp
from jax.experimental import pallas as pl
from jax.experimental.pallas import tpu as pltpu


def _rnn_head_kernel(x_ref, w_ref, out_ref, *, T, B, E, H, n_out):
    """Fused 2-layer tanh RNN + linear head + sigmoid + max-over-batch.

    x_ref  : (T*B, E)  time-major flattened input (row index = t*B + b)
    w_ref  : packed weight slab (see _pack_weights for the row layout)
    out_ref: (T, n_out)
    """
    H2 = 2 * H
    r_ih0 = H2
    r_ih1 = r_ih0 + E
    r_lin = r_ih1 + H
    r_b = r_lin + H

    # Static slices of the single packed weight slab (one DMA at entry).
    w_rec = w_ref[0:H2, 0:H2]               # blockdiag(whh0^T, whh1^T)
    wih0T = w_ref[r_ih0:r_ih0 + E, 0:H]     # (E, H)
    wih1T = w_ref[r_ih1:r_ih1 + H, 0:H]     # (H, H)
    wlinT = w_ref[r_lin:r_lin + H, 0:n_out]  # (H, n_out)
    b0 = w_ref[r_b:r_b + 1, 0:H]            # b_ih0 + b_hh0  (pre-summed)
    b1 = w_ref[r_b + 1:r_b + 2, 0:H]        # b_ih1 + b_hh1  (pre-summed)
    blin = w_ref[r_b + 2:r_b + 3, 0:n_out]

    # Layer-0 input projection has no carry dependence -> one hoisted matmul
    # off the sequential chain (default MXU precision; HIGHEST dropped).
    pre0 = jnp.dot(x_ref[...], wih0T,
                   preferred_element_type=jnp.float32) + b0          # (T*B, H)

    h = jnp.zeros((B, H2), jnp.float32)     # fused carry [h0 | h1]
    h1_rows = []
    for t in range(T):                      # static unroll: T is small & static
        if t == 0:
            # zero initial hidden state -> recurrent contribution is exactly 0
            h0n = jnp.tanh(pre0[0:B, :])
            h1n = jnp.tanh(
                jnp.dot(h0n, wih1T, preferred_element_type=jnp.float32) + b1)
        else:
            rec = jnp.dot(h, w_rec, preferred_element_type=jnp.float32)  # (B, 2H)
            h0n = jnp.tanh(pre0[t * B:(t + 1) * B, :] + rec[:, 0:H])
            h1n = jnp.tanh(
                jnp.dot(h0n, wih1T, preferred_element_type=jnp.float32)
                + b1 + rec[:, H:H2])
        if t + 1 < T:
            h = jnp.concatenate([h0n, h1n], axis=1)                  # next carry
        h1_rows.append(h1n)

    # Hoisted head: one matmul, one sigmoid, T tiny batch-maxes, one dense store.
    h1_all = jnp.concatenate(h1_rows, axis=0)                        # (T*B, H)
    s = jax.nn.sigmoid(
        jnp.dot(h1_all, wlinT, preferred_element_type=jnp.float32) + blin)
    rows = [jnp.max(s[t * B:(t + 1) * B, :], axis=0, keepdims=True)
            for t in range(T)]
    out_ref[...] = jnp.concatenate(rows, axis=0)                     # (T, n_out)


def _pack_weights(p):
    """Pack all weights/biases into one contiguous (rows, 2H) slab.

    Row layout:
      [0,      2H)       blockdiag(whh0^T, whh1^T)
      [2H,     2H+E)     w_ih0^T           (cols 0:H)
      [2H+E,   2H+E+H)   w_ih1^T           (cols 0:H)
      [.. ,    ..+H)     w_lin^T           (cols 0:n_out)
      last 3 rows:       b_ih0+b_hh0, b_ih1+b_hh1, b_lin
    """
    H = p["w_hh0"].shape[0]
    E = p["w_ih0"].shape[1]
    n_out = p["w_lin"].shape[0]
    H2 = 2 * H
    slab = jnp.zeros((H2 + E + 2 * H + 3, H2), jnp.float32)
    slab = slab.at[0:H, 0:H].set(p["w_hh0"].T)
    slab = slab.at[H:H2, H:H2].set(p["w_hh1"].T)
    r = H2
    slab = slab.at[r:r + E, 0:H].set(p["w_ih0"].T); r += E
    slab = slab.at[r:r + H, 0:H].set(p["w_ih1"].T); r += H
    slab = slab.at[r:r + H, 0:n_out].set(p["w_lin"].T); r += H
    slab = slab.at[r, 0:H].set(p["b_ih0"] + p["b_hh0"])
    slab = slab.at[r + 1, 0:H].set(p["b_ih1"] + p["b_hh1"])
    slab = slab.at[r + 2, 0:n_out].set(p["b_lin"])
    return slab


def word_embedding_avg_pooling(x, params):
    """x: (T, B, E) float32, seq-first like nn.RNN(batch_first=False).

    Returns (T, n_out) float32.
    """
    T, B, E = x.shape
    H = params["w_hh0"].shape[0]
    n_out = params["w_lin"].shape[0]
    # Linear(embedding_dim, n_out) is applied to the RNN hidden output, so the
    # original module only works when embedding_dim == hidden_size.
    assert E == H, "original module requires embedding_dim == rnn hidden size"

    slab = _pack_weights(params)        # single packed weight DMA
    x_flat = x.reshape(T * B, E)        # time-major rows: index = t*B + b

    kernel = functools.partial(_rnn_head_kernel, T=T, B=B, E=E, H=H, n_out=n_out)
    vmem = pl.BlockSpec(memory_space=pltpu.MemorySpace.VMEM)
    return pl.pallas_call(
        kernel,
        out_shape=jax.ShapeDtypeStruct((T, n_out), jnp.float32),
        in_specs=[vmem, vmem],
        out_specs=vmem,
    )(x_flat, slab)


def reference_forward(x, p):
    """Pure-JAX reference matching the PyTorch forward."""
    T, B, _ = x.shape
    H = p["w_hh0"].shape[0]
    h0 = jnp.zeros((B, H), jnp.float32)
    h1 = jnp.zeros((B, H), jnp.float32)
    outs = []
    for t in range(T):
        xt = x[t]
        h0 = jnp.tanh(xt @ p["w_ih0"].T + p["b_ih0"] + h0 @ p["w_hh0"].T + p["b_hh0"])
        h1 = jnp.tanh(h0 @ p["w_ih1"].T + p["b_ih1"] + h1 @ p["w_hh1"].T + p["b_hh1"])
        outs.append(jax.nn.sigmoid(h1 @ p["w_lin"].T + p["b_lin"]))
    out = jnp.stack(outs, axis=0)        # (T, B, n_out)
    return jnp.max(out, axis=1)          # max over batch (torch dim=1)


def init_params(key, embedding_dim, hidden, n_out):
    """Deterministic init mimicking PyTorch's U(-1/sqrt(H), 1/sqrt(H))."""
    ks = jax.random.split(key, 11)
    bound = 1.0 / jnp.sqrt(hidden)

    def u(k, shape):
        return jax.random.uniform(k, shape, jnp.float32, -bound, bound)

    return {
        "w_ih0": u(ks[0], (hidden, embedding_dim)),
        "w_hh0": u(ks[1], (hidden, hidden)),
        "b_ih0": u(ks[2], (hidden,)),
        "b_hh0": u(ks[3], (hidden,)),
        "w_ih1": u(ks[4], (hidden, hidden)),
        "w_hh1": u(ks[5], (hidden, hidden)),
        "b_ih1": u(ks[6], (hidden,)),
        "b_hh1": u(ks[7], (hidden,)),
        "w_lin": u(ks[8], (n_out, embedding_dim)),   # Linear(embedding_dim, n_out)
        "b_lin": u(ks[9], (n_out,)),
    }


if __name__ == "__main__":
    SEQ_LEN = 8
    BATCH = 2
    EMBEDDING_DIM = 20   # must equal the RNN hidden size (20) for the original code
    HIDDEN = 20
    N_OUT = 4
    VOCAB_SIZE = 100     # unused in forward

    key = jax.random.PRNGKey(0)
    k_x, k_p = jax.random.split(key)
    x = jax.random.normal(k_x, (SEQ_LEN, BATCH, EMBEDDING_DIM), jnp.float32)
    params = init_params(k_p, EMBEDDING_DIM, HIDDEN, N_OUT)

    out = word_embedding_avg_pooling(x, params)
    out = jax.block_until_ready(out)

    ref = reference_forward(x, params)
    assert out.shape == (SEQ_LEN, N_OUT), out.shape
    # Tolerance relaxed from 1e-3: precision=HIGHEST was dropped per perf
    # review, so both kernel and reference run at default (bf16-pass) matmul
    # precision; outputs are post-sigmoid values in (0, 1).
    assert jnp.allclose(out, ref, rtol=5e-3, atol=5e-3), (out, ref)

    print("KERNEL_OK")
</pallas_src>

<mosaic_0001>
module attributes {stable_mosaic.version = 11 : i64} {
  func.func @_rnn_head_kernel(%arg0: memref<16x20xf32, #tpu.memory_space<vmem>>, %arg1: memref<103x40xf32, #tpu.memory_space<vmem>>, %arg2: memref<8x4xf32, #tpu.memory_space<vmem>>) attributes {dimension_semantics = [], scalar_prefetch = 0 : i64, scratch_operands = 0 : i64, tpu.core_type = #tpu.core_type<tc>} {
    %c0 = arith.constant 0 : index
    %c0_0 = arith.constant 0 : index
    %0 = vector.load %arg1[%c0, %c0_0] : memref<103x40xf32, #tpu.memory_space<vmem>>, vector<40x40xf32>
    %c40 = arith.constant 40 : index
    %c0_1 = arith.constant 0 : index
    %1 = vector.load %arg1[%c40, %c0_1] : memref<103x40xf32, #tpu.memory_space<vmem>>, vector<20x20xf32>
    %c60 = arith.constant 60 : index
    %c0_2 = arith.constant 0 : index
    %2 = vector.load %arg1[%c60, %c0_2] : memref<103x40xf32, #tpu.memory_space<vmem>>, vector<20x20xf32>
    %c80 = arith.constant 80 : index
    %c0_3 = arith.constant 0 : index
    %3 = vector.load %arg1[%c80, %c0_3] : memref<103x40xf32, #tpu.memory_space<vmem>>, vector<20x4xf32>
    %c100 = arith.constant 100 : index
    %c0_4 = arith.constant 0 : index
    %4 = vector.load %arg1[%c100, %c0_4] : memref<103x40xf32, #tpu.memory_space<vmem>>, vector<1x20xf32>
    %c101 = arith.constant 101 : index
    %c0_5 = arith.constant 0 : index
    %5 = vector.load %arg1[%c101, %c0_5] : memref<103x40xf32, #tpu.memory_space<vmem>>, vector<1x20xf32>
    %c102 = arith.constant 102 : index
    %c0_6 = arith.constant 0 : index
    %6 = vector.load %arg1[%c102, %c0_6] : memref<103x40xf32, #tpu.memory_space<vmem>>, vector<1x4xf32>
    %c0_7 = arith.constant 0 : index
    %c0_8 = arith.constant 0 : index
    %7 = vector.load %arg0[%c0_7, %c0_8] : memref<16x20xf32, #tpu.memory_space<vmem>>, vector<16x20xf32>
    %cst = arith.constant dense<0.000000e+00> : vector<16x20xf32>
    %8 = tpu.matmul %7, %1, %cst {dimension_numbers = #tpu.dot_dimension_numbers<[1], [0], [0], [1], [0, 0, 1, 1], [], []>} : vector<16x20xf32>, vector<20x20xf32>, vector<16x20xf32> -> vector<16x20xf32>
    %9 = vector.broadcast %4 : vector<1x20xf32> to vector<16x20xf32>
    %10 = arith.addf %8, %9 : vector<16x20xf32>
    %11 = vector.extract_strided_slice %10 {offsets = [0, 0], sizes = [2, 20], strides = [1, 1]} : vector<16x20xf32> to vector<2x20xf32>
    %12 = math.tanh %11 : vector<2x20xf32>
    %cst_9 = arith.constant dense<0.000000e+00> : vector<2x20xf32>
    %13 = tpu.matmul %12, %2, %cst_9 {dimension_numbers = #tpu.dot_dimension_numbers<[1], [0], [0], [1], [0, 0, 1, 1], [], []>} : vector<2x20xf32>, vector<20x20xf32>, vector<2x20xf32> -> vector<2x20xf32>
    %14 = vector.broadcast %5 : vector<1x20xf32> to vector<2x20xf32>
    %15 = arith.addf %13, %14 : vector<2x20xf32>
    %16 = math.tanh %15 : vector<2x20xf32>
    %17 = tpu.concatenate %12, %16 in 1 : vector<2x20xf32>, vector<2x20xf32> -> vector<2x40xf32>
    %cst_10 = arith.constant dense<0.000000e+00> : vector<2x40xf32>
    %18 = tpu.matmul %17, %0, %cst_10 {dimension_numbers = #tpu.dot_dimension_numbers<[1], [0], [0], [1], [0, 0, 1, 1], [], []>} : vector<2x40xf32>, vector<40x40xf32>, vector<2x40xf32> -> vector<2x40xf32>
    %19 = vector.extract_strided_slice %10 {offsets = [2, 0], sizes = [2, 20], strides = [1, 1]} : vector<16x20xf32> to vector<2x20xf32>
    %20 = vector.extract_strided_slice %18 {offsets = [0, 0], sizes = [2, 20], strides = [1, 1]} : vector<2x40xf32> to vector<2x20xf32>
    %21 = arith.addf %19, %20 : vector<2x20xf32>
    %22 = math.tanh %21 : vector<2x20xf32>
    %cst_11 = arith.constant dense<0.000000e+00> : vector<2x20xf32>
    %23 = tpu.matmul %22, %2, %cst_11 {dimension_numbers = #tpu.dot_dimension_numbers<[1], [0], [0], [1], [0, 0, 1, 1], [], []>} : vector<2x20xf32>, vector<20x20xf32>, vector<2x20xf32> -> vector<2x20xf32>
    %24 = vector.broadcast %5 : vector<1x20xf32> to vector<2x20xf32>
    %25 = arith.addf %23, %24 : vector<2x20xf32>
    %26 = vector.extract_strided_slice %18 {offsets = [0, 20], sizes = [2, 20], strides = [1, 1]} : vector<2x40xf32> to vector<2x20xf32>
    %27 = arith.addf %25, %26 : vector<2x20xf32>
    %28 = math.tanh %27 : vector<2x20xf32>
    %29 = tpu.concatenate %22, %28 in 1 : vector<2x20xf32>, vector<2x20xf32> -> vector<2x40xf32>
    %cst_12 = arith.constant dense<0.000000e+00> : vector<2x40xf32>
    %30 = tpu.matmul %29, %0, %cst_12 {dimension_numbers = #tpu.dot_dimension_numbers<[1], [0], [0], [1], [0, 0, 1, 1], [], []>} : vector<2x40xf32>, vector<40x40xf32>, vector<2x40xf32> -> vector<2x40xf32>
    %31 = vector.extract_strided_slice %10 {offsets = [4, 0], sizes = [2, 20], strides = [1, 1]} : vector<16x20xf32> to vector<2x20xf32>
    %32 = vector.extract_strided_slice %30 {offsets = [0, 0], sizes = [2, 20], strides = [1, 1]} : vector<2x40xf32> to vector<2x20xf32>
    %33 = arith.addf %31, %32 : vector<2x20xf32>
    %34 = math.tanh %33 : vector<2x20xf32>
    %cst_13 = arith.constant dense<0.000000e+00> : vector<2x20xf32>
    %35 = tpu.matmul %34, %2, %cst_13 {dimension_numbers = #tpu.dot_dimension_numbers<[1], [0], [0], [1], [0, 0, 1, 1], [], []>} : vector<2x20xf32>, vector<20x20xf32>, vector<2x20xf32> -> vector<2x20xf32>
    %36 = vector.broadcast %5 : vector<1x20xf32> to vector<2x20xf32>
    %37 = arith.addf %35, %36 : vector<2x20xf32>
    %38 = vector.extract_strided_slice %30 {offsets = [0, 20], sizes = [2, 20], strides = [1, 1]} : vector<2x40xf32> to vector<2x20xf32>
    %39 = arith.addf %37, %38 : vector<2x20xf32>
    %40 = math.tanh %39 : vector<2x20xf32>
    %41 = tpu.concatenate %34, %40 in 1 : vector<2x20xf32>, vector<2x20xf32> -> vector<2x40xf32>
    %cst_14 = arith.constant dense<0.000000e+00> : vector<2x40xf32>
    %42 = tpu.matmul %41, %0, %cst_14 {dimension_numbers = #tpu.dot_dimension_numbers<[1], [0], [0], [1], [0, 0, 1, 1], [], []>} : vector<2x40xf32>, vector<40x40xf32>, vector<2x40xf32> -> vector<2x40xf32>
    %43 = vector.extract_strided_slice %10 {offsets = [6, 0], sizes = [2, 20], strides = [1, 1]} : vector<16x20xf32> to vector<2x20xf32>
    %44 = vector.extract_strided_slice %42 {offsets = [0, 0], sizes = [2, 20], strides = [1, 1]} : vector<2x40xf32> to vector<2x20xf32>
    %45 = arith.addf %43, %44 : vector<2x20xf32>
    %46 = math.tanh %45 : vector<2x20xf32>
    %cst_15 = arith.constant dense<0.000000e+00> : vector<2x20xf32>
    %47 = tpu.matmul %46, %2, %cst_15 {dimension_numbers = #tpu.dot_dimension_numbers<[1], [0], [0], [1], [0, 0, 1, 1], [], []>} : vector<2x20xf32>, vector<20x20xf32>, vector<2x20xf32> -> vector<2x20xf32>
    %48 = vector.broadcast %5 : vector<1x20xf32> to vector<2x20xf32>
    %49 = arith.addf %47, %48 : vector<2x20xf32>
    %50 = vector.extract_strided_slice %42 {offsets = [0, 20], sizes = [2, 20], strides = [1, 1]} : vector<2x40xf32> to vector<2x20xf32>
    %51 = arith.addf %49, %50 : vector<2x20xf32>
    %52 = math.tanh %51 : vector<2x20xf32>
    %53 = tpu.concatenate %46, %52 in 1 : vector<2x20xf32>, vector<2x20xf32> -> vector<2x40xf32>
    %cst_16 = arith.constant dense<0.000000e+00> : vector<2x40xf32>
    %54 = tpu.matmul %53, %0, %cst_16 {dimension_numbers = #tpu.dot_dimension_numbers<[1], [0], [0], [1], [0, 0, 1, 1], [], []>} : vector<2x40xf32>, vector<40x40xf32>, vector<2x40xf32> -> vector<2x40xf32>
    %55 = vector.extract_strided_slice %10 {offsets = [8, 0], sizes = [2, 20], strides = [1, 1]} : vector<16x20xf32> to vector<2x20xf32>
    %56 = vector.extract_strided_slice %54 {offsets = [0, 0], sizes = [2, 20], strides = [1, 1]} : vector<2x40xf32> to vector<2x20xf32>
    %57 = arith.addf %55, %56 : vector<2x20xf32>
    %58 = math.tanh %57 : vector<2x20xf32>
    %cst_17 = arith.constant dense<0.000000e+00> : vector<2x20xf32>
    %59 = tpu.matmul %58, %2, %cst_17 {dimension_numbers = #tpu.dot_dimension_numbers<[1], [0], [0], [1], [0, 0, 1, 1], [], []>} : vector<2x20xf32>, vector<20x20xf32>, vector<2x20xf32> -> vector<2x20xf32>
    %60 = vector.broadcast %5 : vector<1x20xf32> to vector<2x20xf32>
    %61 = arith.addf %59, %60 : vector<2x20xf32>
    %62 = vector.extract_strided_slice %54 {offsets = [0, 20], sizes = [2, 20], strides = [1, 1]} : vector<2x40xf32> to vector<2x20xf32>
    %63 = arith.addf %61, %62 : vector<2x20xf32>
    %64 = math.tanh %63 : vector<2x20xf32>
    %65 = tpu.concatenate %58, %64 in 1 : vector<2x20xf32>, vector<2x20xf32> -> vector<2x40xf32>
    %cst_18 = arith.constant dense<0.000000e+00> : vector<2x40xf32>
    %66 = tpu.matmul %65, %0, %cst_18 {dimension_numbers = #tpu.dot_dimension_numbers<[1], [0], [0], [1], [0, 0, 1, 1], [], []>} : vector<2x40xf32>, vector<40x40xf32>, vector<2x40xf32> -> vector<2x40xf32>
    %67 = vector.extract_strided_slice %10 {offsets = [10, 0], sizes = [2, 20], strides = [1, 1]} : vector<16x20xf32> to vector<2x20xf32>
    %68 = vector.extract_strided_slice %66 {offsets = [0, 0], sizes = [2, 20], strides = [1, 1]} : vector<2x40xf32> to vector<2x20xf32>
    %69 = arith.addf %67, %68 : vector<2x20xf32>
    %70 = math.tanh %69 : vector<2x20xf32>
    %cst_19 = arith.constant dense<0.000000e+00> : vector<2x20xf32>
    %71 = tpu.matmul %70, %2, %cst_19 {dimension_numbers = #tpu.dot_dimension_numbers<[1], [0], [0], [1], [0, 0, 1, 1], [], []>} : vector<2x20xf32>, vector<20x20xf32>, vector<2x20xf32> -> vector<2x20xf32>
    %72 = vector.broadcast %5 : vector<1x20xf32> to vector<2x20xf32>
    %73 = arith.addf %71, %72 : vector<2x20xf32>
    %74 = vector.extract_strided_slice %66 {offsets = [0, 20], sizes = [2, 20], strides = [1, 1]} : vector<2x40xf32> to vector<2x20xf32>
    %75 = arith.addf %73, %74 : vector<2x20xf32>
    %76 = math.tanh %75 : vector<2x20xf32>
    %77 = tpu.concatenate %70, %76 in 1 : vector<2x20xf32>, vector<2x20xf32> -> vector<2x40xf32>
    %cst_20 = arith.constant dense<0.000000e+00> : vector<2x40xf32>
    %78 = tpu.matmul %77, %0, %cst_20 {dimension_numbers = #tpu.dot_dimension_numbers<[1], [0], [0], [1], [0, 0, 1, 1], [], []>} : vector<2x40xf32>, vector<40x40xf32>, vector<2x40xf32> -> vector<2x40xf32>
    %79 = vector.extract_strided_slice %10 {offsets = [12, 0], sizes = [2, 20], strides = [1, 1]} : vector<16x20xf32> to vector<2x20xf32>
    %80 = vector.extract_strided_slice %78 {offsets = [0, 0], sizes = [2, 20], strides = [1, 1]} : vector<2x40xf32> to vector<2x20xf32>
    %81 = arith.addf %79, %80 : vector<2x20xf32>
    %82 = math.tanh %81 : vector<2x20xf32>
    %cst_21 = arith.constant dense<0.000000e+00> : vector<2x20xf32>
    %83 = tpu.matmul %82, %2, %cst_21 {dimension_numbers = #tpu.dot_dimension_numbers<[1], [0], [0], [1], [0, 0, 1, 1], [], []>} : vector<2x20xf32>, vector<20x20xf32>, vector<2x20xf32> -> vector<2x20xf32>
    %84 = vector.broadcast %5 : vector<1x20xf32> to vector<2x20xf32>
    %85 = arith.addf %83, %84 : vector<2x20xf32>
    %86 = vector.extract_strided_slice %78 {offsets = [0, 20], sizes = [2, 20], strides = [1, 1]} : vector<2x40xf32> to vector<2x20xf32>
    %87 = arith.addf %85, %86 : vector<2x20xf32>
    %88 = math.tanh %87 : vector<2x20xf32>
    %89 = tpu.concatenate %82, %88 in 1 : vector<2x20xf32>, vector<2x20xf32> -> vector<2x40xf32>
    %cst_22 = arith.constant dense<0.000000e+00> : vector<2x40xf32>
    %90 = tpu.matmul %89, %0, %cst_22 {dimension_numbers = #tpu.dot_dimension_numbers<[1], [0], [0], [1], [0, 0, 1, 1], [], []>} : vector<2x40xf32>, vector<40x40xf32>, vector<2x40xf32> -> vector<2x40xf32>
    %91 = vector.extract_strided_slice %10 {offsets = [14, 0], sizes = [2, 20], strides = [1, 1]} : vector<16x20xf32> to vector<2x20xf32>
    %92 = vector.extract_strided_slice %90 {offsets = [0, 0], sizes = [2, 20], strides = [1, 1]} : vector<2x40xf32> to vector<2x20xf32>
    %93 = arith.addf %91, %92 : vector<2x20xf32>
    %94 = math.tanh %93 : vector<2x20xf32>
    %cst_23 = arith.constant dense<0.000000e+00> : vector<2x20xf32>
    %95 = tpu.matmul %94, %2, %cst_23 {dimension_numbers = #tpu.dot_dimension_numbers<[1], [0], [0], [1], [0, 0, 1, 1], [], []>} : vector<2x20xf32>, vector<20x20xf32>, vector<2x20xf32> -> vector<2x20xf32>
    %96 = vector.broadcast %5 : vector<1x20xf32> to vector<2x20xf32>
    %97 = arith.addf %95, %96 : vector<2x20xf32>
    %98 = vector.extract_strided_slice %90 {offsets = [0, 20], sizes = [2, 20], strides = [1, 1]} : vector<2x40xf32> to vector<2x20xf32>
    %99 = arith.addf %97, %98 : vector<2x20xf32>
    %100 = math.tanh %99 : vector<2x20xf32>
    %101 = tpu.concatenate %16, %28, %40, %52, %64, %76, %88, %100 in 0 : vector<2x20xf32>, vector<2x20xf32>, vector<2x20xf32>, vector<2x20xf32>, vector<2x20xf32>, vector<2x20xf32>, vector<2x20xf32>, vector<2x20xf32> -> vector<16x20xf32>
    %cst_24 = arith.constant dense<0.000000e+00> : vector<16x4xf32>
    %102 = tpu.matmul %101, %3, %cst_24 {dimension_numbers = #tpu.dot_dimension_numbers<[1], [0], [0], [1], [0, 0, 1, 1], [], []>} : vector<16x20xf32>, vector<20x4xf32>, vector<16x4xf32> -> vector<16x4xf32>
    %103 = vector.broadcast %6 : vector<1x4xf32> to vector<16x4xf32>
    %104 = arith.addf %102, %103 : vector<16x4xf32>
    %105 = arith.negf %104 : vector<16x4xf32>
    %106 = math.exp %105 : vector<16x4xf32>
    %cst_25 = arith.constant 1.000000e+00 : f32
    %107 = vector.broadcast %cst_25 : f32 to vector<16x4xf32>
    %108 = arith.addf %107, %106 : vector<16x4xf32>
    %109 = arith.divf %107, %108 : vector<16x4xf32>
    %110 = vector.extract_strided_slice %109 {offsets = [0, 0], sizes = [2, 4], strides = [1, 1]} : vector<16x4xf32> to vector<2x4xf32>
    %cst_26 = arith.constant dense<0xFF800000> : vector<4xf32>
    %111 = vector.multi_reduction <maximumf>, %110, %cst_26 [0] : vector<2x4xf32> to vector<4xf32>
    %112 = vector.shape_cast %111 : vector<4xf32> to vector<1x4xf32>
    %113 = vector.extract_strided_slice %109 {offsets = [2, 0], sizes = [2, 4], strides = [1, 1]} : vector<16x4xf32> to vector<2x4xf32>
    %cst_27 = arith.constant dense<0xFF800000> : vector<4xf32>
    %114 = vector.multi_reduction <maximumf>, %113, %cst_27 [0] : vector<2x4xf32> to vector<4xf32>
    %115 = vector.shape_cast %114 : vector<4xf32> to vector<1x4xf32>
    %116 = vector.extract_strided_slice %109 {offsets = [4, 0], sizes = [2, 4], strides = [1, 1]} : vector<16x4xf32> to vector<2x4xf32>
    %cst_28 = arith.constant dense<0xFF800000> : vector<4xf32>
    %117 = vector.multi_reduction <maximumf>, %116, %cst_28 [0] : vector<2x4xf32> to vector<4xf32>
    %118 = vector.shape_cast %117 : vector<4xf32> to vector<1x4xf32>
    %119 = vector.extract_strided_slice %109 {offsets = [6, 0], sizes = [2, 4], strides = [1, 1]} : vector<16x4xf32> to vector<2x4xf32>
    %cst_29 = arith.constant dense<0xFF800000> : vector<4xf32>
    %120 = vector.multi_reduction <maximumf>, %119, %cst_29 [0] : vector<2x4xf32> to vector<4xf32>
    %121 = vector.shape_cast %120 : vector<4xf32> to vector<1x4xf32>
    %122 = vector.extract_strided_slice %109 {offsets = [8, 0], sizes = [2, 4], strides = [1, 1]} : vector<16x4xf32> to vector<2x4xf32>
    %cst_30 = arith.constant dense<0xFF800000> : vector<4xf32>
    %123 = vector.multi_reduction <maximumf>, %122, %cst_30 [0] : vector<2x4xf32> to vector<4xf32>
    %124 = vector.shape_cast %123 : vector<4xf32> to vector<1x4xf32>
    %125 = vector.extract_strided_slice %109 {offsets = [10, 0], sizes = [2, 4], strides = [1, 1]} : vector<16x4xf32> to vector<2x4xf32>
    %cst_31 = arith.constant dense<0xFF800000> : vector<4xf32>
    %126 = vector.multi_reduction <maximumf>, %125, %cst_31 [0] : vector<2x4xf32> to vector<4xf32>
    %127 = vector.shape_cast %126 : vector<4xf32> to vector<1x4xf32>
    %128 = vector.extract_strided_slice %109 {offsets = [12, 0], sizes = [2, 4], strides = [1, 1]} : vector<16x4xf32> to vector<2x4xf32>
    %cst_32 = arith.constant dense<0xFF800000> : vector<4xf32>
    %129 = vector.multi_reduction <maximumf>, %128, %cst_32 [0] : vector<2x4xf32> to vector<4xf32>
    %130 = vector.shape_cast %129 : vector<4xf32> to vector<1x4xf32>
    %131 = vector.extract_strided_slice %109 {offsets = [14, 0], sizes = [2, 4], strides = [1, 1]} : vector<16x4xf32> to vector<2x4xf32>
    %cst_33 = arith.constant dense<0xFF800000> : vector<4xf32>
    %132 = vector.multi_reduction <maximumf>, %131, %cst_33 [0] : vector<2x4xf32> to vector<4xf32>
    %133 = vector.shape_cast %132 : vector<4xf32> to vector<1x4xf32>
    %134 = tpu.concatenate %112, %115, %118, %121, %124, %127, %130, %133 in 0 : vector<1x4xf32>, vector<1x4xf32>, vector<1x4xf32>, vector<1x4xf32>, vector<1x4xf32>, vector<1x4xf32>, vector<1x4xf32>, vector<1x4xf32> -> vector<8x4xf32>
    %c0_34 = arith.constant 0 : index
    %c0_35 = arith.constant 0 : index
    %135 = vector.load %arg2[%c0_34, %c0_35] : memref<8x4xf32, #tpu.memory_space<vmem>>, vector<8x4xf32>
    tpu.vector_store %arg2[%c0_34, %c0_35], %134 {strides = array<i32>} : memref<8x4xf32, #tpu.memory_space<vmem>>, vector<8x4xf32>,
    return
  }
}

</mosaic_0001>

<bundles_post_ra>
// kernel: tpu_custom_call.1
= control target key start
LH: loop header
LB: loop body
LE: loop exit
PB: predicated region body
PF: predicated region fallthrough
CT: control target
= control target key end

     0   :  { %vm34_vm0 = vcmask 162816   ;;  %vm41_vm1 = vcmask 1043456   ;;  %v1955_v8 = vmov 0.0|0.0   ;;  %vm1956_vm2 = vmmov 0   ;;  %s1958_s10 = smov 20   ;;  %s1959_s11 = smov 108   ;;  %s2243_s1 = inlined_call_operand.vmem [shape: f32[103,40], index: 1, kind: input, shape index: {}]   ;;  %s2244_s0 = inlined_call_operand.vmem [shape: f32[16,20], index: 0, kind: input, shape index: {}]   ;;  %s2245_s2 = inlined_call_operand.vmem [shape: f32[8,4], index: 2, kind: output, shape index: {}]  }
   0x1   :  { %v16_v0 = vld [vmem:[%s2243_s1 + $0x28] sm:$0xff]  ;;  %v17_v1 = vld [vmem:[%s2243_s1 + $0x30] sm:$0xff]  ;;  %v28_v3 = vld [vmem:[%s2244_s0] sm:$0xff]  ;;  %1840 = vmatprep.subr.bf16.mxu1 %v1955_v8  ;;  %v1957_v10 = vmov 0.0   ;;  %vm207_vm3 = vcmask 326656   ;;  %vm1352_vm4 = vcmask 1041408  }
   0x2   :  { %v1836_v2 = vpack.c.bf16 %v17_v1, %v16_v0  ;;  %v18_v4 = vld [vmem:[%s2243_s1 + $0x38] sm:$0xf]  ;;  %1661 = vmatprep.mubr.msk.f32.mxu0 %vm34_vm0, %v28_v3  ;;  %v29_v5 = vld [vmem:[%s2244_s0 + $0x8] sm:$0xff]  ;;  %v19_v6 = vld [vmem:[%s2243_s1 + $0x3c] sm:$0xff]  ;;  %1670 = vmatprep.mubr.msk.f32.mxu1 %vm1956_vm2, %v1957_v10  ;;  %vm1355_vm5 = vcmask 1045504   ;;  %vm1460_vm6 = vcmask 25600  }
   0x3   :  { %v20_v7 = vld [vmem:[%s2243_s1 + $0x44] sm:$0xff]  ;;  %v2013_v11 = vld [vmem:[%s2243_s1 + $0x4c] sm:$0xf]  ;;  %v13_v20 = vld [vmem:[%s2243_s1 + $0x10] sm:$0xff]  ;;  %vm1468_vm7 = vcmask 27650   ;;  %vm1476_vm8 = vcmask 29700  }
   0x4   :  { %1837 = vmatprep.subr.bf16.mxu0 %v1836_v2  ;;  %v2001_v9 = vpack.c.bf16 %v20_v7, %v19_v6  ;;  %v1537_v12 = vld [vmem:[%s2243_s1 + $0x64] ss:$0 sm:$0xff]  ;;  %v12_v19 = vld [vmem:[%s2243_s1 + $0x8] sm:$0xff]  ;;  %v14_v22 = vld [vmem:[%s2243_s1 + $0x18] sm:$0xff]  ;;  %vm1484_vm9 = vcmask 31750   ;;  %vm1520_vm10 = vcmask 1040384  }
   0x5   :  { %1839 = vmatpush3.bf16.msra.mxu0 %v1836_v2  ;;  %v11_v18 = vld [vmem:[%s2243_s1] sm:$0xff]  ;;  %v2049_v23 = vpack.c.bf16 %v14_v22, %v13_v20  ;;  %vm1523_vm11 = vcmask 1042432   ;;  %vm1526_vm12 = vcmask 1044480   ;;  %vm1529_vm13 = vcmask 1046528  }
   0x6   :  { %1659 = vmatprep.subr.msk.mxu0 %vm41_vm1, %v18_v4  ;;  %1842 = vmatpush3.bf16.msra.mxu1 %v2001_v9  ;;  %v2043_v21 = vpack.c.bf16 %v12_v19, %v11_v18  ;;  %v2057_v24 = vld [vmem:[%s2243_s1 + $0x65] ss:$0 sm:$0xff]  ;;  %vm1531_vm14 = vcmask 31744  }
   0x7   :  { %1668 = vmatprep.subr.mxu1 %v1957_v10  ;;  %v2062_v26 = vld [vmem:[%s2243_s1 + $0x20] sm:$0xff] }
   0x9   :  { %1660 = vmatpush3.msk.msra.mxu0 %vm41_vm1, %v18_v4 }
   0xa   :  { %1662 = vmatmul.mubr.msk.f32.vlgmr.msra.gmra.mrb[0].mxu0 %vm34_vm0, %v29_v5  ;;  %1843 = vmatprep.subr.bf16.mxu0 %v1955_v8 }
   0xb   :  { %1683 = vmatprep.mubr.msk.f32.mxu0 %vm1956_vm2, %v1957_v10  ;;  %1669 = vmatpush3.msk.msra.mxu1 %vm41_vm1, %v2013_v11 }
   0xc   :  { %1849 = vmatprep.subr.bf16.mxu1 %v1955_v8  ;;  %1845 = vmatpush3.bf16.msra.mxu0 %v2043_v21 }
   0xd   :  { %1846 = vmatprep.subr.bf16.mxu0 %v1955_v8 }
  0x10   :  { %1848 = vmatpush3.bf16.msra.mxu0 %v2049_v23 }
  0x11   :  { %1681 = vmatprep.subr.mxu0 %v1957_v10 }
  0x14   :  { %1682 = vmatpush3.msra.mxu0 %v2062_v26 }
  0x15   :  { %1858 = vmatprep.subr.bf16.mxu0 %v1955_v8 }
  0xdd   :  { %v1663_v13 = vpop.f32.mrb[0].mxu0 }
  0xde   :  { %v2021_v14 = vadd.f32 %v1663_v13, %v1537_v12  ;;  %v111_v15 = vpop.f32.mrb[1].mxu0 }
  0xdf   :  { %v2023_v16 = vadd.f32 %v1537_v12, %v111_v15 }
  0xe1   :  { %1915 = vtanh.f32 %v2023_v16 }
  0xeb   :  { %v1916_v17 = vpop.eup %1915 }
  0xec   :  { %1671 = vmatmul.mubr.msk.f32.vlgmr.msra.gmra.mrb[0].mxu1 %vm34_vm0, %v1916_v17 }
  0xed   :  { %1851 = vmatpush3.bf16.msra.mxu1 %v2001_v9  ;;  %1692 = vmatprep.mubr.msk.f32.mxu1 %vm1956_vm2, %v1957_v10 }
  0xee   :  { %1690 = vmatprep.subr.mxu1 %v1957_v10 }
  0xf1   :  { %1691 = vmatpush3.msk.msra.mxu1 %vm41_vm1, %v2013_v11 }
  0xf2   :  { %1852 = vmatprep.subr.bf16.mxu1 %v1955_v8 }
 0x1bf   :  { %v197_v25 = vpop.f32.mrb[0].mxu1 }
 0x1c0   :  { %v198_v27 = vadd.f32 %v2057_v24, %v197_v25  ;;  %v1672_v28 = vpop.f32.mrb[1].mxu1 }
 0x1c2   :  { %1917 = vtanh.f32 %v198_v27 }
 0x1cc   :  { %v2067_v29 = vpop.eup %1917 }
 0x1cd   :  { %203 = vrot.lane.b32.xlu0 %v2067_v29, %s1958_s10 }
 0x23f   :  { %v204_v30 = vpop.permute.xlu0 %203 }
 0x240   :  { %v206_v31 = vsel %vm34_vm0, %v1916_v17, %v204_v30 }
 0x241   :  { %1684 = vmatmul.mubr.msk.f32.vlgmr.msra.gmra.mrb[2].mxu0 %vm207_vm3, %v206_v31 }
 0x242   :  { %1860 = vmatpush3.bf16.msra.mxu0 %v2001_v9  ;;  %1714 = vmatprep.mubr.msk.f32.mxu0 %vm1956_vm2, %v1957_v10 }
 0x243   :  { %1712 = vmatprep.subr.mxu0 %v1957_v10 }
 0x246   :  { %1713 = vmatpush3.msk.msra.mxu0 %vm41_vm1, %v2013_v11 }
 0x247   :  { %1861 = vmatprep.subr.bf16.mxu0 %v1955_v8 }
 0x314   :  { %v277_v32 = vpop.f32.mrb[2].mxu0 }
 0x315   :  { %v282_v33 = vrot.slane %v277_v32, 6  ;;  %360 = vrot.lane.b32.xlu0 %v277_v32, %s1959_s11  ;;  %v1685_v34 = vpop.f32.mrb[3].mxu0 }
 0x317   :  { %v284_v35 = vadd.f32 %v282_v33, %v2023_v16 }
 0x319   :  { %1919 = vtanh.f32 %v284_v35 }
 0x323   :  { %v1920_v36 = vpop.eup %1919 }
 0x324   :  { %v287_v37 = vrot.slane %v1920_v36, 2 }
 0x326   :  { %1693 = vmatmul.mubr.msk.f32.vlgmr.msra.gmra.mrb[2].mxu1 %vm34_vm0, %v287_v37 }
 0x327   :  { %1854 = vmatpush3.bf16.msra.mxu1 %v2043_v21  ;;  %1705 = vmatprep.mubr.msk.f32.mxu1 %vm1956_vm2, %v1957_v10 }
 0x328   :  { %1855 = vmatprep.subr.bf16.mxu1 %v1955_v8 }
 0x32b   :  { %1857 = vmatpush3.bf16.msra.mxu1 %v2049_v23 }
 0x32c   :  { %1703 = vmatprep.subr.mxu1 %v1957_v10 }
 0x32f   :  { %1704 = vmatpush3.msra.mxu1 %v2062_v26 }
 0x330   :  { %1867 = vmatprep.subr.bf16.mxu1 %v1955_v8 }
 0x387   :  { %v361_v41 = vpop.permute.xlu0 %360 }
 0x3f9   :  { %v356_v38 = vpop.f32.mrb[2].mxu1 }
 0x3fa   :  { %v357_v39 = vadd.f32 %v2057_v24, %v356_v38  ;;  %v1694_v40 = vpop.f32.mrb[3].mxu1 }
 0x3fc   :  { %v363_v42 = vadd.f32 %v361_v41, %v357_v39 }
 0x3fe   :  { %1921 = vtanh.f32 %v363_v42 }
 0x408   :  { %v1922_v43 = vpop.eup %1921 }
 0x409   :  { %v366_v44 = vrot.slane %v1922_v43, 6 }
 0x40b   :  { %367 = vrot.lane.b32.xlu1 %v366_v44, %s1958_s10  ;;  %v1353_v61 = vsel %vm1352_vm4, %v2067_v29, %v366_v44 }
 0x47d   :  { %v368_v45 = vpop.permute.xlu1 %367 }
 0x47e   :  { %v370_v46 = vsel %vm34_vm0, %v1920_v36, %v368_v45 }
 0x47f   :  { %v372_v47 = vrot.slane %v370_v46, 2 }
 0x481   :  { %1706 = vmatmul.mubr.msk.f32.vlgmr.msra.gmra.mrb[4].mxu1 %vm207_vm3, %v372_v47 }
 0x482   :  { %1869 = vmatpush3.bf16.msra.mxu1 %v2001_v9  ;;  %1736 = vmatprep.mubr.msk.f32.mxu1 %vm1956_vm2, %v1957_v10 }
 0x483   :  { %1734 = vmatprep.subr.mxu1 %v1957_v10 }
 0x486   :  { %1735 = vmatpush3.msk.msra.mxu1 %vm41_vm1, %v2013_v11 }
 0x487   :  { %1870 = vmatprep.subr.bf16.mxu1 %v1955_v8 }
 0x554   :  { %v441_v48 = vpop.f32.mrb[4].mxu1 }
 0x555   :  { %v446_v49 = vrot.slane %v441_v48, 4  ;;  %524 = vrot.lane.b32.xlu1 %v441_v48, %s1959_s11  ;;  %v1707_v50 = vpop.f32.mrb[5].mxu1 }
 0x557   :  { %v448_v51 = vadd.f32 %v446_v49, %v2023_v16 }
 0x559   :  { %1923 = vtanh.f32 %v448_v51 }
 0x563   :  { %v1924_v52 = vpop.eup %1923 }
 0x564   :  { %v451_v53 = vrot.slane %v1924_v52, 4 }
 0x566   :  { %1715 = vmatmul.mubr.msk.f32.vlgmr.msra.gmra.mrb[4].mxu0 %vm34_vm0, %v451_v53 }
 0x567   :  { %1863 = vmatpush3.bf16.msra.mxu0 %v2043_v21  ;;  %1727 = vmatprep.mubr.msk.f32.mxu0 %vm1956_vm2, %v1957_v10 }
 0x568   :  { %1864 = vmatprep.subr.bf16.mxu0 %v1955_v8 }
 0x56b   :  { %1866 = vmatpush3.bf16.msra.mxu0 %v2049_v23 }
 0x56c   :  { %1725 = vmatprep.subr.mxu0 %v1957_v10 }
 0x56f   :  { %1726 = vmatpush3.msra.mxu0 %v2062_v26 }
 0x570   :  { %1876 = vmatprep.subr.bf16.mxu0 %v1955_v8 }
 0x5c7   :  { %v525_v57 = vpop.permute.xlu1 %524 }
 0x639   :  { %v520_v54 = vpop.f32.mrb[4].mxu0 }
 0x63a   :  { %v521_v55 = vadd.f32 %v2057_v24, %v520_v54  ;;  %v1716_v56 = vpop.f32.mrb[5].mxu0 }
 0x63c   :  { %v527_v58 = vadd.f32 %v525_v57, %v521_v55 }
 0x63e   :  { %1925 = vtanh.f32 %v527_v58 }
 0x648   :  { %v1926_v59 = vpop.eup %1925 }
 0x649   :  { %v530_v60 = vrot.slane %v1926_v59, 4 }
 0x64b   :  { %531 = vrot.lane.b32.xlu0 %v530_v60, %s1958_s10  ;;  %v1354_v62 = vsel %vm41_vm1, %v1353_v61, %v530_v60 }
 0x6bd   :  { %v532_v63 = vpop.permute.xlu0 %531 }
 0x6be   :  { %v534_v0 = vsel %vm34_vm0, %v1924_v52, %v532_v63 }
 0x6bf   :  { %v536_v1 = vrot.slane %v534_v0, 4 }
 0x6c1   :  { %1728 = vmatmul.mubr.msk.f32.vlgmr.msra.gmra.mrb[6].mxu0 %vm207_vm3, %v536_v1 }
 0x6c2   :  { %1878 = vmatpush3.bf16.msra.mxu0 %v2001_v9  ;;  %1758 = vmatprep.mubr.msk.f32.mxu0 %vm1956_vm2, %v1957_v10 }
 0x6c3   :  { %1756 = vmatprep.subr.mxu0 %v1957_v10 }
 0x6c6   :  { %1757 = vmatpush3.msk.msra.mxu0 %vm41_vm1, %v2013_v11 }
 0x6c7   :  { %1879 = vmatprep.subr.bf16.mxu0 %v1955_v8 }
 0x794   :  { %v605_v2 = vpop.f32.mrb[6].mxu0 }
 0x795   :  { %v610_v3 = vrot.slane %v605_v2, 2  ;;  %688 = vrot.lane.b32.xlu1 %v605_v2, %s1959_s11  ;;  %v1729_v4 = vpop.f32.mrb[7].mxu0 }
 0x797   :  { %v612_v5 = vadd.f32 %v610_v3, %v2023_v16 }
 0x799   :  { %1927 = vtanh.f32 %v612_v5 }
 0x7a3   :  { %v1928_v6 = vpop.eup %1927 }
 0x7a4   :  { %v615_v7 = vrot.slane %v1928_v6, 6 }
 0x7a6   :  { %1737 = vmatmul.mubr.msk.f32.vlgmr.msra.gmra.mrb[6].mxu1 %vm34_vm0, %v615_v7 }
 0x7a7   :  { %1872 = vmatpush3.bf16.msra.mxu1 %v2043_v21  ;;  %1749 = vmatprep.mubr.msk.f32.mxu1 %vm1956_vm2, %v1957_v10 }
 0x7a8   :  { %1873 = vmatprep.subr.bf16.mxu1 %v1955_v8 }
 0x7ab   :  { %1875 = vmatpush3.bf16.msra.mxu1 %v2049_v23 }
 0x7ac   :  { %1747 = vmatprep.subr.mxu1 %v1957_v10 }
 0x7af   :  { %1748 = vmatpush3.msra.mxu1 %v2062_v26 }
 0x7b0   :  { %1885 = vmatprep.subr.bf16.mxu1 %v1955_v8 }
 0x807   :  { %v689_v16 = vpop.permute.xlu1 %688 }
 0x879   :  { %v684_v12 = vpop.f32.mrb[6].mxu1 }
 0x87a   :  { %v685_v13 = vadd.f32 %v2057_v24, %v684_v12  ;;  %v1738_v15 = vpop.f32.mrb[7].mxu1 }
 0x87b   :  { %v23_v15 = vld [vmem:[%s2243_s1 + $0x58] sm:$0xff] }
 0x87c   :  { %v691_v17 = vadd.f32 %v689_v16, %v685_v13  ;;  %v22_v13 = vld [vmem:[%s2243_s1 + $0x50] sm:$0xff] }
 0x87d   :  { %v1906_v16 = vpack.c.bf16 %v23_v15, %v22_v13 }
 0x87e   :  { %1929 = vtanh.f32 %v691_v17 }
 0x888   :  { %v1930_v18 = vpop.eup %1929 }
 0x889   :  { %v694_v19 = vrot.slane %v1930_v18, 2 }
 0x88b   :  { %695 = vrot.lane.b32.xlu0 %v694_v19, %s1958_s10  ;;  %v2141_v20 = vsel %vm1355_vm5, %v1354_v62, %v694_v19 }
 0x8fd   :  { %v696_v22 = vpop.permute.xlu0 %695 }
 0x8fe   :  { %v698_v25 = vsel %vm34_vm0, %v1928_v6, %v696_v22 }
 0x8ff   :  { %v700_v27 = vrot.slane %v698_v25, 6 }
 0x901   :  { %1750 = vmatmul.mubr.msk.f32.vlgmr.msra.gmra.mrb[8].mxu1 %vm207_vm3, %v700_v27 }
 0x902   :  { %1887 = vmatpush3.bf16.msra.mxu1 %v2001_v9  ;;  %1780 = vmatprep.mubr.msk.f32.mxu1 %vm1956_vm2, %v1957_v10 }
 0x903   :  { %1778 = vmatprep.subr.mxu1 %v1957_v10 }
 0x906   :  { %1779 = vmatpush3.msk.msra.mxu1 %vm41_vm1, %v2013_v11 }
 0x907   :  { %1888 = vmatprep.subr.bf16.mxu1 %v1955_v8 }
 0x9d4   :  { %v769_v28 = vpop.f32.mrb[8].mxu1 }
 0x9d5   :  { %v773_v29 = vadd.f32 %v769_v28, %v2021_v14  ;;  %849 = vrot.lane.b32.xlu1 %v769_v28, %s1959_s11  ;;  %v1751_v30 = vpop.f32.mrb[9].mxu1 }
 0x9d7   :  { %1931 = vtanh.f32 %v773_v29  ;;  %v1565_v29 = vld [vmem:[%s2243_s1 + $0x66] ss:$0 sm:$0xff] }
 0x9e1   :  { %v1932_v31 = vpop.eup %1931 }
 0x9e2   :  { %1759 = vmatmul.mubr.msk.f32.vlgmr.msra.gmra.mrb[8].mxu0 %vm34_vm0, %v1932_v31 }
 0x9e3   :  { %1881 = vmatpush3.bf16.msra.mxu0 %v2043_v21  ;;  %1771 = vmatprep.mubr.msk.f32.mxu0 %vm1956_vm2, %v1957_v10 }
 0x9e4   :  { %1882 = vmatprep.subr.bf16.mxu0 %v1955_v8 }
 0x9e7   :  { %1884 = vmatpush3.bf16.msra.mxu0 %v2049_v23 }
 0x9e8   :  { %1769 = vmatprep.subr.mxu0 %v1957_v10 }
 0x9eb   :  { %1770 = vmatpush3.msra.mxu0 %v2062_v26 }
 0x9ec   :  { %1894 = vmatprep.subr.bf16.mxu0 %v1955_v8 }
 0xa47   :  { %v850_v35 = vpop.permute.xlu1 %849 }
 0xab5   :  { %v844_v32 = vpop.f32.mrb[8].mxu0 }
 0xab6   :  { %v845_v33 = vadd.f32 %v2057_v24, %v844_v32  ;;  %v1760_v34 = vpop.f32.mrb[9].mxu0 }
 0xab8   :  { %v852_v36 = vadd.f32 %v850_v35, %v845_v33 }
 0xaba   :  { %1933 = vtanh.f32 %v852_v36 }
 0xac4   :  { %v2164_v37 = vpop.eup %1933 }
 0xac5   :  { %855 = vrot.lane.b32.xlu0 %v2164_v37, %s1958_s10 }
 0xb37   :  { %v856_v38 = vpop.permute.xlu0 %855 }
 0xb38   :  { %v858_v39 = vsel %vm34_vm0, %v1932_v31, %v856_v38 }
 0xb39   :  { %1772 = vmatmul.mubr.msk.f32.vlgmr.msra.gmra.mrb[10].mxu0 %vm207_vm3, %v858_v39 }
 0xb3a   :  { %1896 = vmatpush3.bf16.msra.mxu0 %v2001_v9  ;;  %1802 = vmatprep.mubr.msk.f32.mxu0 %vm1956_vm2, %v1957_v10 }
 0xb3b   :  { %1800 = vmatprep.subr.mxu0 %v1957_v10 }
 0xb3e   :  { %1801 = vmatpush3.msk.msra.mxu0 %vm41_vm1, %v2013_v11 }
 0xb3f   :  { %1897 = vmatprep.subr.bf16.mxu0 %v1955_v8 }
 0xc0c   :  { %v928_v40 = vpop.f32.mrb[10].mxu0 }
 0xc0d   :  { %v933_v41 = vrot.slane %v928_v40, 6  ;;  %1011 = vrot.lane.b32.xlu1 %v928_v40, %s1959_s11  ;;  %v1773_v42 = vpop.f32.mrb[11].mxu0 }
 0xc0f   :  { %v935_v43 = vadd.f32 %v933_v41, %v2021_v14 }
 0xc11   :  { %1935 = vtanh.f32 %v935_v43 }
 0xc1b   :  { %v1936_v44 = vpop.eup %1935 }
 0xc1c   :  { %v938_v45 = vrot.slane %v1936_v44, 2 }
 0xc1e   :  { %1781 = vmatmul.mubr.msk.f32.vlgmr.msra.gmra.mrb[10].mxu1 %vm34_vm0, %v938_v45 }
 0xc1f   :  { %1890 = vmatpush3.bf16.msra.mxu1 %v2043_v21  ;;  %1793 = vmatprep.mubr.msk.f32.mxu1 %vm1956_vm2, %v1957_v10 }
 0xc20   :  { %1891 = vmatprep.subr.bf16.mxu1 %v1955_v8 }
 0xc23   :  { %1893 = vmatpush3.bf16.msra.mxu1 %v2049_v23 }
 0xc24   :  { %1791 = vmatprep.subr.mxu1 %v1957_v10 }
 0xc27   :  { %1792 = vmatpush3.msra.mxu1 %v2062_v26 }
 0xc28   :  { %1903 = vmatprep.subr.bf16.mxu1 %v1955_v8 }
 0xc7f   :  { %v1012_v49 = vpop.permute.xlu1 %1011 }
 0xcf1   :  { %v1007_v46 = vpop.f32.mrb[10].mxu1 }
 0xcf2   :  { %v1008_v47 = vadd.f32 %v2057_v24, %v1007_v46  ;;  %v1782_v48 = vpop.f32.mrb[11].mxu1 }
 0xcf4   :  { %v1014_v50 = vadd.f32 %v1012_v49, %v1008_v47 }
 0xcf6   :  { %1937 = vtanh.f32 %v1014_v50 }
 0xd00   :  { %v1938_v51 = vpop.eup %1937 }
 0xd01   :  { %v1017_v52 = vrot.slane %v1938_v51, 6 }
 0xd03   :  { %1018 = vrot.lane.b32.xlu0 %v1017_v52, %s1958_s10  ;;  %v1357_v2 = vsel %vm1352_vm4, %v2164_v37, %v1017_v52 }
 0xd75   :  { %v1019_v53 = vpop.permute.xlu0 %1018 }
 0xd76   :  { %v1021_v54 = vsel %vm34_vm0, %v1936_v44, %v1019_v53 }
 0xd77   :  { %v1023_v55 = vrot.slane %v1021_v54, 2 }
 0xd79   :  { %1794 = vmatmul.mubr.msk.f32.vlgmr.msra.gmra.mrb[12].mxu1 %vm207_vm3, %v1023_v55 }
 0xd7a   :  { %1905 = vmatpush3.bf16.msra.mxu1 %v2001_v9  ;;  %1824 = vmatprep.mubr.msk.f32.mxu1 %vm1956_vm2, %v1957_v10 }
 0xd7b   :  { %1822 = vmatprep.subr.mxu1 %v1957_v10 }
 0xd7e   :  { %1823 = vmatpush3.msk.msra.mxu1 %vm41_vm1, %v2013_v11 }
 0xd7f   :  { %1907 = vmatprep.subr.bf16.mxu1 %v1906_v16 }
 0xe4c   :  { %v1092_v56 = vpop.f32.mrb[12].mxu1 }
 0xe4d   :  { %v1097_v57 = vrot.slane %v1092_v56, 4  ;;  %1175 = vrot.lane.b32.xlu1 %v1092_v56, %s1959_s11  ;;  %v1795_v58 = vpop.f32.mrb[13].mxu1 }
 0xe4f   :  { %v1099_v59 = vadd.f32 %v1097_v57, %v2021_v14 }
 0xe51   :  { %1939 = vtanh.f32 %v1099_v59 }
 0xe5b   :  { %v1940_v60 = vpop.eup %1939 }
 0xe5c   :  { %v1102_v61 = vrot.slane %v1940_v60, 4 }
 0xe5e   :  { %1803 = vmatmul.mubr.msk.f32.vlgmr.msra.gmra.mrb[12].mxu0 %vm34_vm0, %v1102_v61 }
 0xe5f   :  { %1899 = vmatpush3.bf16.msra.mxu0 %v2043_v21  ;;  %1815 = vmatprep.mubr.msk.f32.mxu0 %vm1956_vm2, %v1957_v10 }
 0xe60   :  { %1900 = vmatprep.subr.bf16.mxu0 %v1955_v8 }
 0xe63   :  { %1902 = vmatpush3.bf16.msra.mxu0 %v2049_v23 }
 0xe64   :  { %1813 = vmatprep.subr.mxu0 %v1957_v10 }
 0xe67   :  { %1814 = vmatpush3.msra.mxu0 %v2062_v26 }
 0xebf   :  { %v1176_v63 = vpop.permute.xlu1 %1175 }
 0xf31   :  { %v1171_v9 = vpop.f32.mrb[12].mxu0 }
 0xf32   :  { %v1172_v11 = vadd.f32 %v2057_v24, %v1171_v9  ;;  %v1804_v62 = vpop.f32.mrb[13].mxu0 }
 0xf34   :  { %v1178_v0 = vadd.f32 %v1176_v63, %v1172_v11 }
 0xf36   :  { %1941 = vtanh.f32 %v1178_v0 }
 0xf40   :  { %v1942_v1 = vpop.eup %1941 }
 0xf41   :  { %v1181_v21 = vrot.slane %v1942_v1, 4 }
 0xf43   :  { %1182 = vrot.lane.b32.xlu0 %v1181_v21, %s1958_s10  ;;  %v1358_v8 = vsel %vm41_vm1, %v1357_v2, %v1181_v21 }
 0xfb5   :  { %v1183_v23 = vpop.permute.xlu0 %1182 }
 0xfb6   :  { %v1185_v10 = vsel %vm34_vm0, %v1940_v60, %v1183_v23 }
 0xfb7   :  { %v1187_v26 = vrot.slane %v1185_v10, 4 }
 0xfb9   :  { %1816 = vmatmul.mubr.msk.f32.vlgmr.msra.gmra.mrb[14].mxu0 %vm207_vm3, %v1187_v26 }
0x108c   :  { %v1256_v3 = vpop.f32.mrb[14].mxu0 }
0x108d   :  { %v1261_v4 = vrot.slane %v1256_v3, 2  ;;  %1339 = vrot.lane.b32.xlu1 %v1256_v3, %s1959_s11  ;;  %v1817_v5 = vpop.f32.mrb[15].mxu0 }
0x108f   :  { %v1263_v6 = vadd.f32 %v1261_v4, %v2021_v14  ;;  %v24_v14 = vld [vmem:[%s2243_s1 + $0x60] sm:$0xf] }
0x1091   :  { %1943 = vtanh.f32 %v1263_v6 }
0x109b   :  { %v1944_v7 = vpop.eup %1943 }
0x109c   :  { %v1266_v12 = vrot.slane %v1944_v7, 6 }
0x109e   :  { %1825 = vmatmul.mubr.msk.f32.vlgmr.msra.gmra.mrb[14].mxu1 %vm34_vm0, %v1266_v12 }
0x109f   :  { %1833 = vmatprep.mubr.msk.f32.mxu1 %vm34_vm0, %v2141_v20  ;;  %1909 = vmatpush3.bf16.msra.mxu1 %v1906_v16 }
0x10a0   :  { %1831 = vmatprep.subr.msk.mxu1 %vm41_vm1, %v24_v14 }
0x10a3   :  { %1832 = vmatpush3.msk.msra.mxu1 %vm41_vm1, %v24_v14 }
0x10ff   :  { %v1340_v20 = vpop.permute.xlu1 %1339 }
0x1171   :  { %v1335_v17 = vpop.f32.mrb[14].mxu1 }
0x1172   :  { %v1336_v18 = vadd.f32 %v2057_v24, %v1335_v17  ;;  %v1826_v19 = vpop.f32.mrb[15].mxu1 }
0x1174   :  { %v1342_v22 = vadd.f32 %v1340_v20, %v1336_v18 }
0x1176   :  { %1945 = vtanh.f32 %v1342_v22 }
0x1180   :  { %v1946_v25 = vpop.eup %1945 }
0x1181   :  { %v1350_v27 = vrot.slane %v1946_v25, 2 }
0x1183   :  { %v1359_v28 = vsel %vm1355_vm5, %v1358_v8, %v1350_v27 }
0x1184   :  { %1834 = vmatmul.mubr.msk.f32.vlgmr.msra.gmra.mrb[16].mxu1 %vm34_vm0, %v1359_v28 }
0x1257   :  { %v1835_v30 = vpop.f32.mrb[16].mxu1 }
0x1258   :  { %v1445_v31 = vadd.f32 %v1835_v30, %v1565_v29  ;;  %v1439_v32 = vpop.f32.mrb[17].mxu1 }
0x1259   :  { %v1440_v33 = vadd.f32 %v1565_v29, %v1439_v32 }
0x125a   :  { %v1570_v34 = vmul.f32 -1.442695, %v1445_v31 }
0x125b   :  { %v1569_v24 = vmul.f32 -1.442695, %v1440_v33 }
0x125c   :  { %1947 = vpow2.f32 %v1570_v34 }
0x125d   :  { %1949 = vpow2.f32 %v1569_v24 }
0x1266   :  { %v1948_v35 = vpop.eup %1947 }
0x1267   :  { %v1950_v36 = vpop.eup %1949  ;;  %v1455_v37 = vadd.f32 1.0, %v1948_v35 }
0x1268   :  { %v1454_v38 = vadd.f32 1.0, %v1950_v36 }
0x1269   :  { %1951 = vrcp.f32 %v1455_v37 }
0x126a   :  { %1953 = vrcp.f32 %v1454_v38 }
0x1273   :  { %v1952_v39 = vpop.eup %1951 }
0x1274   :  { %v1954_v40 = vpop.eup %1953  ;;  %v1492_v41 = vsel %vm1460_vm6, %v1952_v39, -inf  ;;  %v1499_v42 = vsel %vm1468_vm7, %v1952_v39, -inf  ;;  %v1506_v43 = vsel %vm1476_vm8, %v1952_v39, -inf  ;;  %v1513_v44 = vsel %vm1484_vm9, %v1952_v39, -inf }
0x1275   :  { %v1493_v45 = vrot.slane %v1492_v41, 4  ;;  %v1500_v46 = vrot.slane %v1499_v42, 4  ;;  %v1507_v47 = vrot.slane %v1506_v43, 4  ;;  %v1514_v48 = vrot.slane %v1513_v44, 4 }
0x1276   :  { %v1461_v49 = vsel %vm1460_vm6, %v1954_v40, -inf  ;;  %v1469_v50 = vsel %vm1468_vm7, %v1954_v40, -inf  ;;  %v1477_v51 = vsel %vm1476_vm8, %v1954_v40, -inf  ;;  %v1485_v52 = vsel %vm1484_vm9, %v1954_v40, -inf }
0x1277   :  { %v1494_v53 = vmax.f32 %v1492_v41, %v1493_v45  ;;  %v1501_v54 = vmax.f32 %v1499_v42, %v1500_v46  ;;  %v1508_v55 = vmax.f32 %v1506_v43, %v1507_v47  ;;  %v1515_v56 = vmax.f32 %v1513_v44, %v1514_v48 }
0x1278   :  { %v1462_v57 = vrot.slane %v1461_v49, 4  ;;  %v1470_v58 = vrot.slane %v1469_v50, 4  ;;  %v1478_v59 = vrot.slane %v1477_v51, 4  ;;  %v1486_v60 = vrot.slane %v1485_v52, 4 }
0x1279   :  { %v1495_v61 = vrot.slane %v1494_v53, 2  ;;  %v1502_v9 = vrot.slane %v1501_v54, 2  ;;  %v1509_v1 = vrot.slane %v1508_v55, 2  ;;  %v1516_v21 = vrot.slane %v1515_v56, 2 }
0x127a   :  { %v1463_v11 = vmax.f32 %v1461_v49, %v1462_v57  ;;  %v1471_v62 = vmax.f32 %v1469_v50, %v1470_v58  ;;  %v1479_v63 = vmax.f32 %v1477_v51, %v1478_v59  ;;  %v1487_v0 = vmax.f32 %v1485_v52, %v1486_v60 }
0x127b   :  { %v1496_v26 = vmax.f32 %v1494_v53, %v1495_v61  ;;  %v1503_v3 = vmax.f32 %v1501_v54, %v1502_v9  ;;  %v1510_v12 = vmax.f32 %v1508_v55, %v1509_v1  ;;  %v1517_v13 = vmax.f32 %v1515_v56, %v1516_v21 }
0x127c   :  { %v1464_v2 = vrot.slane %v1463_v11, 2  ;;  %v1472_v8 = vrot.slane %v1471_v62, 2  ;;  %v1480_v23 = vrot.slane %v1479_v63, 2  ;;  %v1488_v10 = vrot.slane %v1487_v0, 2 }
0x127d   :  { %v1497_v18 = vrot.slane %v1496_v26, 1  ;;  %v1504_v19 = vrot.slane %v1503_v3, 1  ;;  %v1511_v27 = vrot.slane %v1510_v12, 1  ;;  %v1518_v28 = vrot.slane %v1517_v13, 1 }
0x127e   :  { %v1465_v4 = vmax.f32 %v1463_v11, %v1464_v2  ;;  %v1473_v5 = vmax.f32 %v1471_v62, %v1472_v8  ;;  %v1481_v6 = vmax.f32 %v1479_v63, %v1480_v23  ;;  %v1489_v7 = vmax.f32 %v1487_v0, %v1488_v10 }
0x127f   :  { %v1498_v31 = vmax.f32 %v1496_v26, %v1497_v18  ;;  %v1505_v33 = vmax.f32 %v1503_v3, %v1504_v19  ;;  %v1512_v24 = vmax.f32 %v1510_v12, %v1511_v27  ;;  %v1519_v36 = vmax.f32 %v1517_v13, %v1518_v28 }
0x1280   :  { %v1466_v15 = vrot.slane %v1465_v4, 1  ;;  %v1474_v16 = vrot.slane %v1473_v5, 1  ;;  %v1482_v14 = vrot.slane %v1481_v6, 1  ;;  %v1490_v17 = vrot.slane %v1489_v7, 1 }
0x1282   :  { %v1467_v20 = vmax.f32 %v1465_v4, %v1466_v15  ;;  %v1475_v22 = vmax.f32 %v1473_v5, %v1474_v16  ;;  %v1483_v25 = vmax.f32 %v1481_v6, %v1482_v14  ;;  %v1491_v29 = vmax.f32 %v1489_v7, %v1490_v17 }
0x1284   :  { %v1521_v30 = vsel %vm1520_vm10, %v1467_v20, %v1475_v22 }
0x1285   :  { %v1522_v32 = vsel %vm1352_vm4, %v1521_v30, %v1483_v25 }
0x1286   :  { %v1524_v34 = vsel %vm1523_vm11, %v1522_v32, %v1491_v29 }
0x1287   :  { %v1525_v35 = vsel %vm41_vm1, %v1524_v34, %v1498_v31 }
0x1288   :  { %v1527_v37 = vsel %vm1526_vm12, %v1525_v35, %v1505_v33 }
0x1289   :  { %v1528_v38 = vsel %vm1355_vm5, %v1527_v37, %v1512_v24 }
0x128a   :  { %v1530_v39 = vsel %vm1529_vm13, %v1528_v38, %v1519_v36 }
0x128b   :  { %1532 = vst.msk [vmem:[%s2245_s2] sm:$0xff] %vm1531_vm14, %v1530_v39 }

</bundles_post_ra>
